<compile_context>
chip_gen: v7x
topology: tpu7x:2x2x1
jax: 0.10.0
libtpu: 0.0.40
codegen_flags: <defaults>
</compile_context>

<pallas_src>
import math
from functools import partial

import numpy as np

import jax
import jax.numpy as jnp
from jax.experimental import pallas as pl
from jax.experimental.pallas import tpu as pltpu


# ---------------------------------------------------------------------------
# Init-time buffer construction (plain numpy, dense, deterministic).
# Mirrors calc_A_hat / calc_ppr_exact / mask_adj_matrix / track_ppr from the
# PyTorch module's __init__ (scipy.sparse replaced by dense numpy — host glue).
# ---------------------------------------------------------------------------
def calc_A_hat_dense(adj: np.ndarray) -> np.ndarray:
    n = adj.shape[0]
    A = adj + np.eye(n)
    D_vec = A.sum(axis=1)
    d_invsqrt = 1.0 / np.sqrt(D_vec)
    return d_invsqrt[:, None] * A * d_invsqrt[None, :]


def calc_ppr_exact_dense(adj: np.ndarray, alpha: float) -> np.ndarray:
    n = adj.shape[0]
    A_hat = calc_A_hat_dense(adj)
    A_inner = np.eye(n) - (1.0 - alpha) * A_hat
    return alpha * np.linalg.inv(A_inner)


def mask_adj_matrix_dense(adj: np.ndarray, rng: np.random.Generator) -> np.ndarray:
    n = adj.shape[0]
    masked_n_edges = 100
    influenced_n_nodes = int(math.sqrt(masked_n_edges / 2))
    influenced = rng.choice(np.arange(1, n), size=influenced_n_nodes, replace=False)
    masked = adj.copy()
    for i in range(len(influenced)):
        for j in range(i + 1, len(influenced)):
            masked[influenced[i], influenced[j]] = 0.0
            masked[influenced[j], influenced[i]] = 0.0
    return masked


def track_ppr_dense(adj: np.ndarray, masked_adj: np.ndarray,
                    ppr_mat: np.ndarray, alpha: float) -> np.ndarray:
    n = adj.shape[0]
    A = masked_adj + np.eye(n)
    D_invsqrt = np.diag(1.0 / np.sqrt(A.sum(axis=1)))
    M = A @ D_invsqrt
    A_prime = adj + np.eye(n)
    D_invsqrt_p = np.diag(1.0 / np.sqrt(A_prime.sum(axis=1)))
    M_prime = A_prime @ D_invsqrt_p
    diff = M_prime - M
    pushout = alpha * diff @ ppr_mat.T
    acc_pushout = pushout.copy()
    temp = alpha * M_prime
    acc_pushout = acc_pushout + temp @ pushout
    num_itr = 1
    for _ in range(num_itr):
        new_temp = (temp * alpha) @ M_prime
        acc_pushout = acc_pushout + new_temp @ pushout
        temp = new_temp
    return ppr_mat + acc_pushout


# ---------------------------------------------------------------------------
# Pallas kernel.  grid = (num_i, num_k):
#   i : TB-row tile of idx (output rows), k : TK chunk of the N contraction.
#   At k == 0 the full-width rows mat[idx[i*TB : (i+1)*TB], :] are already in
#   gather_buf[i % 2] (prefetched during tile i-1); tile i+1's rows are issued
#   into the other slot before waiting, then the (TB, TK) x (TK, C_pad) MXU
#   matmuls accumulate into the resident f32 output tile.
# ---------------------------------------------------------------------------
def _sdg_kernel(idx_ref, mat_ref, pred_ref, out_ref, gather_buf, sems,
                *, TB, TK, NUM_K):
    i = pl.program_id(0)
    k = pl.program_id(1)
    num_i = pl.num_programs(0)
    slot = i % 2

    def issue_gather(tile, dst_slot):
        # TB independent row DMAs: mat[idx[tile*TB + r], :] -> gather_buf[dst_slot, r, :].
        # Statically unrolled so the scalar/misc slots can co-issue descriptor
        # setup; all copies signal the same per-slot DMA semaphore.
        for r in range(TB):
            row = idx_ref[tile * TB + r]
            pltpu.make_async_copy(
                mat_ref.at[pl.ds(row, 1), :],
                gather_buf.at[dst_slot, pl.ds(r, 1), :],
                sems.at[dst_slot],
            ).start()

    def wait_gather(dst_slot):
        # DMA semaphores count bytes: one aggregate wait with a descriptor
        # covering the whole (TB, N_pad) slot matches the sum of the TB row
        # transfers issued above.
        pltpu.make_async_copy(
            gather_buf.at[dst_slot], gather_buf.at[dst_slot], sems.at[dst_slot]
        ).wait()

    @pl.when(k == 0)
    def _():
        # Prime the pipeline on the very first tile.
        @pl.when(i == 0)
        def _():
            issue_gather(0, 0)

        # Prefetch the NEXT tile's rows into the other slot before waiting, so
        # the DMA overlaps this tile's matmuls and the idx SMEM reads stay
        # ahead of the wait.
        @pl.when(i + 1 < num_i)
        def _():
            issue_gather(i + 1, (i + 1) % 2)

        wait_gather(slot)

    if NUM_K == 1:
        # predictions fully resident: single matmul per tile, no accumulator.
        out_ref[...] = jnp.dot(
            gather_buf[slot], pred_ref[...], preferred_element_type=jnp.float32
        ).astype(out_ref.dtype)
    else:
        @pl.when(k == 0)
        def _():
            out_ref[...] = jnp.zeros_like(out_ref)

        col0 = pl.multiple_of(k * TK, TK)
        lhs = gather_buf[slot, :, pl.ds(col0, TK)]
        out_ref[...] += jnp.dot(
            lhs, pred_ref[...], preferred_element_type=jnp.float32
        ).astype(out_ref.dtype)


def _round_up(x: int, m: int) -> int:
    return (x + m - 1) // m * m


def sdg_forward(mat: jax.Array, predictions: jax.Array, idx: jax.Array,
                *, tb_max: int = 128, tk_max: int = 4096,
                compute_dtype=jnp.float32,
                vmem_budget_bytes: int = 48 * 2**20) -> jax.Array:
    """Computes mat[idx] @ predictions with a hoisted, double-buffered row-gather
    Pallas TPU kernel.  `compute_dtype` is the HBM/VMEM dtype of mat/predictions
    (accumulation is always f32); bfloat16 halves the dominant gather traffic on
    v6e/v7x."""
    # TODO(synk): validate compute_dtype=bfloat16 (packed single-row DMA scatter
    # into a bf16 VMEM buffer) on hardware before using it in production.
    B = int(idx.shape[0])
    N, C = (int(s) for s in predictions.shape)
    assert mat.shape == (N, N)
    elem = jnp.dtype(compute_dtype).itemsize

    # Lane-dense class dim, 128-aligned contraction dim.
    C_pad = _round_up(C, 128)
    N_pad = _round_up(N, 128)

    # K chunk of `predictions`: whole N_pad when it fits (=> resident, num_k==1),
    # otherwise a large chunk so grid-step overhead and DMA count stay low.
    tk_cap = max(128, (8 * 2**20) // (C_pad * elem) // 128 * 128)
    TK = min(tk_max, tk_cap, N_pad)
    N_pad = _round_up(N_pad, TK)

    # Rows per batch tile: as large as possible while the double-buffered
    # full-row gather scratch stays inside ~half the VMEM budget (v7x: 64 MiB).
    tb_cap = max(8, (vmem_budget_bytes // 2) // (2 * N_pad * elem) // 8 * 8)
    TB = max(8, min(tb_max, _round_up(B, 8), tb_cap))
    # TODO(synk): chunk the row gather along N for graphs where even TB=8 full
    # rows exceed the VMEM budget.
    B_pad = _round_up(B, TB)

    num_i = B_pad // TB
    num_k = N_pad // TK

    mat_p = mat.astype(compute_dtype)
    if N_pad != N:
        mat_p = jnp.pad(mat_p, ((0, 0), (0, N_pad - N)))
    pred_p = predictions.astype(compute_dtype)
    if (N_pad, C_pad) != (N, C):
        pred_p = jnp.pad(pred_p, ((0, N_pad - N), (0, C_pad - C)))

    # Clamp indices (DMA safety: out-of-range idx aliases a valid row instead of
    # raising like torch) and pad the batch with row 0.
    idx_p = jnp.clip(idx.astype(jnp.int32), 0, N - 1)
    if B_pad != B:
        idx_p = jnp.pad(idx_p, (0, B_pad - B))

    pred_spec_kwargs = {}
    if num_k >= 3:
        pred_spec_kwargs["pipeline_mode"] = pl.Buffered(3)

    grid_spec = pltpu.PrefetchScalarGridSpec(
        num_scalar_prefetch=1,                                       # idx -> SMEM
        grid=(num_i, num_k),
        in_specs=[
            pl.BlockSpec(memory_space=pl.ANY),                       # mat in HBM
            pl.BlockSpec((TK, C_pad), lambda i, k, idx_sm: (k, 0),   # predictions
                         **pred_spec_kwargs),
        ],
        out_specs=pl.BlockSpec((TB, C_pad), lambda i, k, idx_sm: (i, 0)),
        scratch_shapes=[
            pltpu.VMEM((2, TB, N_pad), compute_dtype),  # double-buffered row gather
            pltpu.SemaphoreType.DMA((2,)),              # one aggregate sem per slot
        ],
    )

    pred_bufs = 3 if num_k >= 3 else 2
    vmem_bytes = (2 * TB * N_pad * elem          # gather double buffer
                  + pred_bufs * TK * C_pad * elem  # predictions pipeline
                  + 2 * TB * C_pad * 4)            # f32 output tile
    vmem_limit = int(min(max(2 * vmem_bytes, 32 * 2**20), 56 * 2**20))

    out = pl.pallas_call(
        partial(_sdg_kernel, TB=TB, TK=TK, NUM_K=num_k),
        out_shape=jax.ShapeDtypeStruct((B_pad, C_pad), jnp.float32),
        grid_spec=grid_spec,
        compiler_params=pltpu.CompilerParams(
            # Both axes "arbitrary": the cross-tile gather prefetch carries DMA
            # state from tile i to i+1, so iteration must stay sequential (a
            # megacore split of i would wait on a never-signalled semaphore).
            dimension_semantics=("arbitrary", "arbitrary"),
            vmem_limit_bytes=vmem_limit,
        ),
    )(idx_p, mat_p, pred_p)

    return out[:B, :C]


# ---------------------------------------------------------------------------
if __name__ == "__main__":
    # Small, deterministic problem sizes.
    N = 32       # number of graph nodes
    C = 16       # number of classes (predictions width)
    B = 8        # number of query indices
    alpha = 0.1

    # Deterministic synthetic symmetric adjacency matrix (no self loops).
    np_rng = np.random.default_rng(0)
    upper = (np_rng.random((N, N)) < 0.25).astype(np.float64)
    upper = np.triu(upper, k=1)
    adj = upper + upper.T

    # Replicate SDG.__init__: mask edges, exact PPR, track updated PPR.
    masked_adj = mask_adj_matrix_dense(adj, np_rng)
    ppr_mat = calc_ppr_exact_dense(masked_adj, alpha)
    t_ppr = track_ppr_dense(adj, masked_adj, ppr_mat, alpha)
    mat = jnp.asarray(t_ppr, dtype=jnp.float32)          # buffer `mat`

    # Forward inputs.
    key = jax.random.PRNGKey(0)
    k_pred, k_idx, k_idx2 = jax.random.split(key, 3)
    predictions = jax.random.normal(k_pred, (N, C), dtype=jnp.float32)
    idx = jax.random.randint(k_idx, (B,), 0, N, dtype=jnp.int32)

    # Pallas kernel forward (dropout is identity since drop_prob=None).
    # TODO(synk): MixedDropout path (drop_prob > 0) not implemented in-kernel.
    out = jax.block_until_ready(sdg_forward(mat, predictions, idx))
    ref = jnp.take(mat, idx, axis=0) @ predictions
    if not np.allclose(np.asarray(out), np.asarray(ref), rtol=1e-4, atol=1e-4):
        raise AssertionError("Pallas SDG output does not match reference (single tile)")

    # Larger batch forced onto TB=8 tiles: exercises the cross-tile
    # double-buffered gather and aggregate-wait path.
    idx2 = jax.random.randint(k_idx2, (24,), 0, N, dtype=jnp.int32)
    out2 = jax.block_until_ready(sdg_forward(mat, predictions, idx2, tb_max=8))
    ref2 = jnp.take(mat, idx2, axis=0) @ predictions
    if not np.allclose(np.asarray(out2), np.asarray(ref2), rtol=1e-4, atol=1e-4):
        raise AssertionError("Pallas SDG output does not match reference (multi tile)")

    print("KERNEL_OK")
</pallas_src>

<mosaic_0001>
module attributes {stable_mosaic.version = 11 : i64} {
  func.func @_sdg_kernel(%arg0: i32, %arg1: i32, %arg2: memref<8xi32, #tpu.memory_space<smem>>, %arg3: memref<32x128xf32, #tpu.memory_space<any>>, %arg4: memref<128x128xf32, #tpu.memory_space<vmem>>, %arg5: memref<8x128xf32, #tpu.memory_space<vmem>>, %arg6: memref<2x8x128xf32, #tpu.memory_space<vmem>>, %arg7: memref<2x!tpu.dma_semaphore, #tpu.memory_space<semaphore_mem>>) attributes {dimension_semantics = [#tpu.dimension_semantics<arbitrary>, #tpu.dimension_semantics<arbitrary>], iteration_bounds = array<i64: 1, 1>, scalar_prefetch = 1 : i64, scratch_operands = 2 : i64, tpu.core_type = #tpu.core_type<tc>, window_params = [{}, {transform_indices = @transform_1, window_bounds = array<i64: 128, 128>}, {transform_indices = @transform_2, window_bounds = array<i64: 8, 128>}]} {
    %c2_i32 = arith.constant 2 : i32
    %c0_i32 = arith.constant 0 : i32
    %0 = arith.cmpi eq, %c2_i32, %c0_i32 : i32
    %c1_i32 = arith.constant 1 : i32
    %1 = arith.select %0, %c1_i32, %c2_i32 : i32
    %2 = arith.remsi %arg0, %1 : i32
    %c0_i32_0 = arith.constant 0 : i32
    %3 = arith.cmpi ne, %2, %c0_i32_0 : i32
    %c0_i32_1 = arith.constant 0 : i32
    %4 = arith.cmpi slt, %2, %c0_i32_1 : i32
    %c0_i32_2 = arith.constant 0 : i32
    %5 = arith.cmpi slt, %1, %c0_i32_2 : i32
    %6 = arith.xori %4, %5 : i1
    %7 = arith.andi %6, %3 : i1
    %8 = arith.addi %2, %1 : i32
    %9 = arith.select %7, %8, %2 : i32
    %c0_i32_3 = arith.constant 0 : i32
    %10 = arith.cmpi eq, %arg1, %c0_i32_3 : i32
    %11 = arith.extui %10 : i1 to i32
    %c0_i32_4 = arith.constant 0 : i32
    %12 = arith.cmpi ne, %11, %c0_i32_4 : i32
    scf.if %12 {
      %c0_i32_10 = arith.constant 0 : i32
      %19 = arith.cmpi eq, %arg0, %c0_i32_10 : i32
      %20 = arith.extui %19 : i1 to i32
      %c0_i32_11 = arith.constant 0 : i32
      %21 = arith.cmpi ne, %20, %c0_i32_11 : i32
      scf.if %21 {
        %c0_19 = arith.constant 0 : index
        %32 = memref.load %arg2[%c0_19] : memref<8xi32, #tpu.memory_space<smem>>
        %c0_i32_20 = arith.constant 0 : i32
        %c0_i32_21 = arith.constant 0 : i32
        %c0_i32_22 = arith.constant 0 : i32
        %33 = tpu.memref_slice %arg3[%32, %c0_i32_22] : memref<32x128xf32, #tpu.memory_space<any>> -> memref<1x128xf32, #tpu.memory_space<any>>
        %c0_i32_23 = arith.constant 0 : i32
        %c0_i32_24 = arith.constant 0 : i32
        %34 = tpu.memref_slice %arg6[%c0_i32_20, %c0_i32_23, %c0_i32_24] : memref<2x8x128xf32, #tpu.memory_space<vmem>> -> memref<1x1x128xf32, #tpu.memory_space<vmem>>
        %35 = tpu.memref_squeeze %34 : memref<1x1x128xf32, #tpu.memory_space<vmem>> -> memref<1x128xf32, #tpu.memory_space<vmem>>
        %36 = tpu.memref_slice %arg7[%c0_i32_21] : memref<2x!tpu.dma_semaphore, #tpu.memory_space<semaphore_mem>> -> memref<1x!tpu.dma_semaphore, #tpu.memory_space<semaphore_mem>>
        %37 = tpu.memref_squeeze %36 : memref<1x!tpu.dma_semaphore, #tpu.memory_space<semaphore_mem>> -> memref<!tpu.dma_semaphore, #tpu.memory_space<semaphore_mem>>
        tpu.enqueue_dma source(%33 : memref<1x128xf32, #tpu.memory_space<any>>) target(%35 : memref<1x128xf32, #tpu.memory_space<vmem>>) target_semaphore(%37 : memref<!tpu.dma_semaphore, #tpu.memory_space<semaphore_mem>>)
        %c1 = arith.constant 1 : index
        %38 = memref.load %arg2[%c1] : memref<8xi32, #tpu.memory_space<smem>>
        %c0_i32_25 = arith.constant 0 : i32
        %c0_i32_26 = arith.constant 0 : i32
        %c0_i32_27 = arith.constant 0 : i32
        %39 = tpu.memref_slice %arg3[%38, %c0_i32_27] : memref<32x128xf32, #tpu.memory_space<any>> -> memref<1x128xf32, #tpu.memory_space<any>>
        %c1_i32_28 = arith.constant 1 : i32
        %c0_i32_29 = arith.constant 0 : i32
        %40 = tpu.memref_slice %arg6[%c0_i32_25, %c1_i32_28, %c0_i32_29] : memref<2x8x128xf32, #tpu.memory_space<vmem>> -> memref<1x1x128xf32, #tpu.memory_space<vmem>>
        %41 = tpu.memref_squeeze %40 : memref<1x1x128xf32, #tpu.memory_space<vmem>> -> memref<1x128xf32, #tpu.memory_space<vmem>>
        %42 = tpu.memref_slice %arg7[%c0_i32_26] : memref<2x!tpu.dma_semaphore, #tpu.memory_space<semaphore_mem>> -> memref<1x!tpu.dma_semaphore, #tpu.memory_space<semaphore_mem>>
        %43 = tpu.memref_squeeze %42 : memref<1x!tpu.dma_semaphore, #tpu.memory_space<semaphore_mem>> -> memref<!tpu.dma_semaphore, #tpu.memory_space<semaphore_mem>>
        tpu.enqueue_dma source(%39 : memref<1x128xf32, #tpu.memory_space<any>>) target(%41 : memref<1x128xf32, #tpu.memory_space<vmem>>) target_semaphore(%43 : memref<!tpu.dma_semaphore, #tpu.memory_space<semaphore_mem>>)
        %c2 = arith.constant 2 : index
        %44 = memref.load %arg2[%c2] : memref<8xi32, #tpu.memory_space<smem>>
        %c0_i32_30 = arith.constant 0 : i32
        %c0_i32_31 = arith.constant 0 : i32
        %c0_i32_32 = arith.constant 0 : i32
        %45 = tpu.memref_slice %arg3[%44, %c0_i32_32] : memref<32x128xf32, #tpu.memory_space<any>> -> memref<1x128xf32, #tpu.memory_space<any>>
        %c2_i32_33 = arith.constant 2 : i32
        %c0_i32_34 = arith.constant 0 : i32
        %46 = tpu.memref_slice %arg6[%c0_i32_30, %c2_i32_33, %c0_i32_34] : memref<2x8x128xf32, #tpu.memory_space<vmem>> -> memref<1x1x128xf32, #tpu.memory_space<vmem>>
        %47 = tpu.memref_squeeze %46 : memref<1x1x128xf32, #tpu.memory_space<vmem>> -> memref<1x128xf32, #tpu.memory_space<vmem>>
        %48 = tpu.memref_slice %arg7[%c0_i32_31] : memref<2x!tpu.dma_semaphore, #tpu.memory_space<semaphore_mem>> -> memref<1x!tpu.dma_semaphore, #tpu.memory_space<semaphore_mem>>
        %49 = tpu.memref_squeeze %48 : memref<1x!tpu.dma_semaphore, #tpu.memory_space<semaphore_mem>> -> memref<!tpu.dma_semaphore, #tpu.memory_space<semaphore_mem>>
        tpu.enqueue_dma source(%45 : memref<1x128xf32, #tpu.memory_space<any>>) target(%47 : memref<1x128xf32, #tpu.memory_space<vmem>>) target_semaphore(%49 : memref<!tpu.dma_semaphore, #tpu.memory_space<semaphore_mem>>)
        %c3 = arith.constant 3 : index
        %50 = memref.load %arg2[%c3] : memref<8xi32, #tpu.memory_space<smem>>
        %c0_i32_35 = arith.constant 0 : i32
        %c0_i32_36 = arith.constant 0 : i32
        %c0_i32_37 = arith.constant 0 : i32
        %51 = tpu.memref_slice %arg3[%50, %c0_i32_37] : memref<32x128xf32, #tpu.memory_space<any>> -> memref<1x128xf32, #tpu.memory_space<any>>
        %c3_i32 = arith.constant 3 : i32
        %c0_i32_38 = arith.constant 0 : i32
        %52 = tpu.memref_slice %arg6[%c0_i32_35, %c3_i32, %c0_i32_38] : memref<2x8x128xf32, #tpu.memory_space<vmem>> -> memref<1x1x128xf32, #tpu.memory_space<vmem>>
        %53 = tpu.memref_squeeze %52 : memref<1x1x128xf32, #tpu.memory_space<vmem>> -> memref<1x128xf32, #tpu.memory_space<vmem>>
        %54 = tpu.memref_slice %arg7[%c0_i32_36] : memref<2x!tpu.dma_semaphore, #tpu.memory_space<semaphore_mem>> -> memref<1x!tpu.dma_semaphore, #tpu.memory_space<semaphore_mem>>
        %55 = tpu.memref_squeeze %54 : memref<1x!tpu.dma_semaphore, #tpu.memory_space<semaphore_mem>> -> memref<!tpu.dma_semaphore, #tpu.memory_space<semaphore_mem>>
        tpu.enqueue_dma source(%51 : memref<1x128xf32, #tpu.memory_space<any>>) target(%53 : memref<1x128xf32, #tpu.memory_space<vmem>>) target_semaphore(%55 : memref<!tpu.dma_semaphore, #tpu.memory_space<semaphore_mem>>)
        %c4 = arith.constant 4 : index
        %56 = memref.load %arg2[%c4] : memref<8xi32, #tpu.memory_space<smem>>
        %c0_i32_39 = arith.constant 0 : i32
        %c0_i32_40 = arith.constant 0 : i32
        %c0_i32_41 = arith.constant 0 : i32
        %57 = tpu.memref_slice %arg3[%56, %c0_i32_41] : memref<32x128xf32, #tpu.memory_space<any>> -> memref<1x128xf32, #tpu.memory_space<any>>
        %c4_i32 = arith.constant 4 : i32
        %c0_i32_42 = arith.constant 0 : i32
        %58 = tpu.memref_slice %arg6[%c0_i32_39, %c4_i32, %c0_i32_42] : memref<2x8x128xf32, #tpu.memory_space<vmem>> -> memref<1x1x128xf32, #tpu.memory_space<vmem>>
        %59 = tpu.memref_squeeze %58 : memref<1x1x128xf32, #tpu.memory_space<vmem>> -> memref<1x128xf32, #tpu.memory_space<vmem>>
        %60 = tpu.memref_slice %arg7[%c0_i32_40] : memref<2x!tpu.dma_semaphore, #tpu.memory_space<semaphore_mem>> -> memref<1x!tpu.dma_semaphore, #tpu.memory_space<semaphore_mem>>
        %61 = tpu.memref_squeeze %60 : memref<1x!tpu.dma_semaphore, #tpu.memory_space<semaphore_mem>> -> memref<!tpu.dma_semaphore, #tpu.memory_space<semaphore_mem>>
        tpu.enqueue_dma source(%57 : memref<1x128xf32, #tpu.memory_space<any>>) target(%59 : memref<1x128xf32, #tpu.memory_space<vmem>>) target_semaphore(%61 : memref<!tpu.dma_semaphore, #tpu.memory_space<semaphore_mem>>)
        %c5 = arith.constant 5 : index
        %62 = memref.load %arg2[%c5] : memref<8xi32, #tpu.memory_space<smem>>
        %c0_i32_43 = arith.constant 0 : i32
        %c0_i32_44 = arith.constant 0 : i32
        %c0_i32_45 = arith.constant 0 : i32
        %63 = tpu.memref_slice %arg3[%62, %c0_i32_45] : memref<32x128xf32, #tpu.memory_space<any>> -> memref<1x128xf32, #tpu.memory_space<any>>
        %c5_i32 = arith.constant 5 : i32
        %c0_i32_46 = arith.constant 0 : i32
        %64 = tpu.memref_slice %arg6[%c0_i32_43, %c5_i32, %c0_i32_46] : memref<2x8x128xf32, #tpu.memory_space<vmem>> -> memref<1x1x128xf32, #tpu.memory_space<vmem>>
        %65 = tpu.memref_squeeze %64 : memref<1x1x128xf32, #tpu.memory_space<vmem>> -> memref<1x128xf32, #tpu.memory_space<vmem>>
        %66 = tpu.memref_slice %arg7[%c0_i32_44] : memref<2x!tpu.dma_semaphore, #tpu.memory_space<semaphore_mem>> -> memref<1x!tpu.dma_semaphore, #tpu.memory_space<semaphore_mem>>
        %67 = tpu.memref_squeeze %66 : memref<1x!tpu.dma_semaphore, #tpu.memory_space<semaphore_mem>> -> memref<!tpu.dma_semaphore, #tpu.memory_space<semaphore_mem>>
        tpu.enqueue_dma source(%63 : memref<1x128xf32, #tpu.memory_space<any>>) target(%65 : memref<1x128xf32, #tpu.memory_space<vmem>>) target_semaphore(%67 : memref<!tpu.dma_semaphore, #tpu.memory_space<semaphore_mem>>)
        %c6 = arith.constant 6 : index
        %68 = memref.load %arg2[%c6] : memref<8xi32, #tpu.memory_space<smem>>
        %c0_i32_47 = arith.constant 0 : i32
        %c0_i32_48 = arith.constant 0 : i32
        %c0_i32_49 = arith.constant 0 : i32
        %69 = tpu.memref_slice %arg3[%68, %c0_i32_49] : memref<32x128xf32, #tpu.memory_space<any>> -> memref<1x128xf32, #tpu.memory_space<any>>
        %c6_i32 = arith.constant 6 : i32
        %c0_i32_50 = arith.constant 0 : i32
        %70 = tpu.memref_slice %arg6[%c0_i32_47, %c6_i32, %c0_i32_50] : memref<2x8x128xf32, #tpu.memory_space<vmem>> -> memref<1x1x128xf32, #tpu.memory_space<vmem>>
        %71 = tpu.memref_squeeze %70 : memref<1x1x128xf32, #tpu.memory_space<vmem>> -> memref<1x128xf32, #tpu.memory_space<vmem>>
        %72 = tpu.memref_slice %arg7[%c0_i32_48] : memref<2x!tpu.dma_semaphore, #tpu.memory_space<semaphore_mem>> -> memref<1x!tpu.dma_semaphore, #tpu.memory_space<semaphore_mem>>
        %73 = tpu.memref_squeeze %72 : memref<1x!tpu.dma_semaphore, #tpu.memory_space<semaphore_mem>> -> memref<!tpu.dma_semaphore, #tpu.memory_space<semaphore_mem>>
        tpu.enqueue_dma source(%69 : memref<1x128xf32, #tpu.memory_space<any>>) target(%71 : memref<1x128xf32, #tpu.memory_space<vmem>>) target_semaphore(%73 : memref<!tpu.dma_semaphore, #tpu.memory_space<semaphore_mem>>)
        %c7 = arith.constant 7 : index
        %74 = memref.load %arg2[%c7] : memref<8xi32, #tpu.memory_space<smem>>
        %c0_i32_51 = arith.constant 0 : i32
        %c0_i32_52 = arith.constant 0 : i32
        %c0_i32_53 = arith.constant 0 : i32
        %75 = tpu.memref_slice %arg3[%74, %c0_i32_53] : memref<32x128xf32, #tpu.memory_space<any>> -> memref<1x128xf32, #tpu.memory_space<any>>
        %c7_i32 = arith.constant 7 : i32
        %c0_i32_54 = arith.constant 0 : i32
        %76 = tpu.memref_slice %arg6[%c0_i32_51, %c7_i32, %c0_i32_54] : memref<2x8x128xf32, #tpu.memory_space<vmem>> -> memref<1x1x128xf32, #tpu.memory_space<vmem>>
        %77 = tpu.memref_squeeze %76 : memref<1x1x128xf32, #tpu.memory_space<vmem>> -> memref<1x128xf32, #tpu.memory_space<vmem>>
        %78 = tpu.memref_slice %arg7[%c0_i32_52] : memref<2x!tpu.dma_semaphore, #tpu.memory_space<semaphore_mem>> -> memref<1x!tpu.dma_semaphore, #tpu.memory_space<semaphore_mem>>
        %79 = tpu.memref_squeeze %78 : memref<1x!tpu.dma_semaphore, #tpu.memory_space<semaphore_mem>> -> memref<!tpu.dma_semaphore, #tpu.memory_space<semaphore_mem>>
        tpu.enqueue_dma source(%75 : memref<1x128xf32, #tpu.memory_space<any>>) target(%77 : memref<1x128xf32, #tpu.memory_space<vmem>>) target_semaphore(%79 : memref<!tpu.dma_semaphore, #tpu.memory_space<semaphore_mem>>)
      } else {
      }
      %c1_i32_12 = arith.constant 1 : i32
      %22 = arith.addi %arg0, %c1_i32_12 : i32
      %c1_i32_13 = arith.constant 1 : i32
      %23 = arith.cmpi slt, %22, %c1_i32_13 : i32
      %24 = arith.extui %23 : i1 to i32
      %c0_i32_14 = arith.constant 0 : i32
      %25 = arith.cmpi ne, %24, %c0_i32_14 : i32
      scf.if %25 {
        %c1_i32_19 = arith.constant 1 : i32
        %32 = arith.addi %arg0, %c1_i32_19 : i32
        %c1_i32_20 = arith.constant 1 : i32
        %33 = arith.addi %arg0, %c1_i32_20 : i32
        %c2_i32_21 = arith.constant 2 : i32
        %c0_i32_22 = arith.constant 0 : i32
        %34 = arith.cmpi eq, %c2_i32_21, %c0_i32_22 : i32
        %c1_i32_23 = arith.constant 1 : i32
        %35 = arith.select %34, %c1_i32_23, %c2_i32_21 : i32
        %36 = arith.remsi %33, %35 : i32
        %c0_i32_24 = arith.constant 0 : i32
        %37 = arith.cmpi ne, %36, %c0_i32_24 : i32
        %c0_i32_25 = arith.constant 0 : i32
        %38 = arith.cmpi slt, %36, %c0_i32_25 : i32
        %c0_i32_26 = arith.constant 0 : i32
        %39 = arith.cmpi slt, %35, %c0_i32_26 : i32
        %40 = arith.xori %38, %39 : i1
        %41 = arith.andi %40, %37 : i1
        %42 = arith.addi %36, %35 : i32
        %43 = arith.select %41, %42, %36 : i32
        %c8_i32 = arith.constant 8 : i32
        %44 = arith.muli %32, %c8_i32 : i32
        %c0_i32_27 = arith.constant 0 : i32
        %45 = arith.addi %44, %c0_i32_27 : i32
        %46 = arith.index_cast %45 : i32 to index
        %47 = memref.load %arg2[%46] : memref<8xi32, #tpu.memory_space<smem>>
        %c0_i32_28 = arith.constant 0 : i32
        %48 = tpu.memref_slice %arg3[%47, %c0_i32_28] : memref<32x128xf32, #tpu.memory_space<any>> -> memref<1x128xf32, #tpu.memory_space<any>>
        %c0_i32_29 = arith.constant 0 : i32
        %c0_i32_30 = arith.constant 0 : i32
        %49 = tpu.memref_slice %arg6[%43, %c0_i32_29, %c0_i32_30] : memref<2x8x128xf32, #tpu.memory_space<vmem>> -> memref<1x1x128xf32, #tpu.memory_space<vmem>>
        %50 = tpu.memref_squeeze %49 : memref<1x1x128xf32, #tpu.memory_space<vmem>> -> memref<1x128xf32, #tpu.memory_space<vmem>>
        %51 = tpu.memref_slice %arg7[%43] : memref<2x!tpu.dma_semaphore, #tpu.memory_space<semaphore_mem>> -> memref<1x!tpu.dma_semaphore, #tpu.memory_space<semaphore_mem>>
        %52 = tpu.memref_squeeze %51 : memref<1x!tpu.dma_semaphore, #tpu.memory_space<semaphore_mem>> -> memref<!tpu.dma_semaphore, #tpu.memory_space<semaphore_mem>>
        tpu.enqueue_dma source(%48 : memref<1x128xf32, #tpu.memory_space<any>>) target(%50 : memref<1x128xf32, #tpu.memory_space<vmem>>) target_semaphore(%52 : memref<!tpu.dma_semaphore, #tpu.memory_space<semaphore_mem>>)
        %c8_i32_31 = arith.constant 8 : i32
        %53 = arith.muli %32, %c8_i32_31 : i32
        %c1_i32_32 = arith.constant 1 : i32
        %54 = arith.addi %53, %c1_i32_32 : i32
        %55 = arith.index_cast %54 : i32 to index
        %56 = memref.load %arg2[%55] : memref<8xi32, #tpu.memory_space<smem>>
        %c0_i32_33 = arith.constant 0 : i32
        %57 = tpu.memref_slice %arg3[%56, %c0_i32_33] : memref<32x128xf32, #tpu.memory_space<any>> -> memref<1x128xf32, #tpu.memory_space<any>>
        %c1_i32_34 = arith.constant 1 : i32
        %c0_i32_35 = arith.constant 0 : i32
        %58 = tpu.memref_slice %arg6[%43, %c1_i32_34, %c0_i32_35] : memref<2x8x128xf32, #tpu.memory_space<vmem>> -> memref<1x1x128xf32, #tpu.memory_space<vmem>>
        %59 = tpu.memref_squeeze %58 : memref<1x1x128xf32, #tpu.memory_space<vmem>> -> memref<1x128xf32, #tpu.memory_space<vmem>>
        %60 = tpu.memref_slice %arg7[%43] : memref<2x!tpu.dma_semaphore, #tpu.memory_space<semaphore_mem>> -> memref<1x!tpu.dma_semaphore, #tpu.memory_space<semaphore_mem>>
        %61 = tpu.memref_squeeze %60 : memref<1x!tpu.dma_semaphore, #tpu.memory_space<semaphore_mem>> -> memref<!tpu.dma_semaphore, #tpu.memory_space<semaphore_mem>>
        tpu.enqueue_dma source(%57 : memref<1x128xf32, #tpu.memory_space<any>>) target(%59 : memref<1x128xf32, #tpu.memory_space<vmem>>) target_semaphore(%61 : memref<!tpu.dma_semaphore, #tpu.memory_space<semaphore_mem>>)
        %c8_i32_36 = arith.constant 8 : i32
        %62 = arith.muli %32, %c8_i32_36 : i32
        %c2_i32_37 = arith.constant 2 : i32
        %63 = arith.addi %62, %c2_i32_37 : i32
        %64 = arith.index_cast %63 : i32 to index
        %65 = memref.load %arg2[%64] : memref<8xi32, #tpu.memory_space<smem>>
        %c0_i32_38 = arith.constant 0 : i32
        %66 = tpu.memref_slice %arg3[%65, %c0_i32_38] : memref<32x128xf32, #tpu.memory_space<any>> -> memref<1x128xf32, #tpu.memory_space<any>>
        %c2_i32_39 = arith.constant 2 : i32
        %c0_i32_40 = arith.constant 0 : i32
        %67 = tpu.memref_slice %arg6[%43, %c2_i32_39, %c0_i32_40] : memref<2x8x128xf32, #tpu.memory_space<vmem>> -> memref<1x1x128xf32, #tpu.memory_space<vmem>>
        %68 = tpu.memref_squeeze %67 : memref<1x1x128xf32, #tpu.memory_space<vmem>> -> memref<1x128xf32, #tpu.memory_space<vmem>>
        %69 = tpu.memref_slice %arg7[%43] : memref<2x!tpu.dma_semaphore, #tpu.memory_space<semaphore_mem>> -> memref<1x!tpu.dma_semaphore, #tpu.memory_space<semaphore_mem>>
        %70 = tpu.memref_squeeze %69 : memref<1x!tpu.dma_semaphore, #tpu.memory_space<semaphore_mem>> -> memref<!tpu.dma_semaphore, #tpu.memory_space<semaphore_mem>>
        tpu.enqueue_dma source(%66 : memref<1x128xf32, #tpu.memory_space<any>>) target(%68 : memref<1x128xf32, #tpu.memory_space<vmem>>) target_semaphore(%70 : memref<!tpu.dma_semaphore, #tpu.memory_space<semaphore_mem>>)
        %c8_i32_41 = arith.constant 8 : i32
        %71 = arith.muli %32, %c8_i32_41 : i32
        %c3_i32 = arith.constant 3 : i32
        %72 = arith.addi %71, %c3_i32 : i32
        %73 = arith.index_cast %72 : i32 to index
        %74 = memref.load %arg2[%73] : memref<8xi32, #tpu.memory_space<smem>>
        %c0_i32_42 = arith.constant 0 : i32
        %75 = tpu.memref_slice %arg3[%74, %c0_i32_42] : memref<32x128xf32, #tpu.memory_space<any>> -> memref<1x128xf32, #tpu.memory_space<any>>
        %c3_i32_43 = arith.constant 3 : i32
        %c0_i32_44 = arith.constant 0 : i32
        %76 = tpu.memref_slice %arg6[%43, %c3_i32_43, %c0_i32_44] : memref<2x8x128xf32, #tpu.memory_space<vmem>> -> memref<1x1x128xf32, #tpu.memory_space<vmem>>
        %77 = tpu.memref_squeeze %76 : memref<1x1x128xf32, #tpu.memory_space<vmem>> -> memref<1x128xf32, #tpu.memory_space<vmem>>
        %78 = tpu.memref_slice %arg7[%43] : memref<2x!tpu.dma_semaphore, #tpu.memory_space<semaphore_mem>> -> memref<1x!tpu.dma_semaphore, #tpu.memory_space<semaphore_mem>>
        %79 = tpu.memref_squeeze %78 : memref<1x!tpu.dma_semaphore, #tpu.memory_space<semaphore_mem>> -> memref<!tpu.dma_semaphore, #tpu.memory_space<semaphore_mem>>
        tpu.enqueue_dma source(%75 : memref<1x128xf32, #tpu.memory_space<any>>) target(%77 : memref<1x128xf32, #tpu.memory_space<vmem>>) target_semaphore(%79 : memref<!tpu.dma_semaphore, #tpu.memory_space<semaphore_mem>>)
        %c8_i32_45 = arith.constant 8 : i32
        %80 = arith.muli %32, %c8_i32_45 : i32
        %c4_i32 = arith.constant 4 : i32
        %81 = arith.addi %80, %c4_i32 : i32
        %82 = arith.index_cast %81 : i32 to index
        %83 = memref.load %arg2[%82] : memref<8xi32, #tpu.memory_space<smem>>
        %c0_i32_46 = arith.constant 0 : i32
        %84 = tpu.memref_slice %arg3[%83, %c0_i32_46] : memref<32x128xf32, #tpu.memory_space<any>> -> memref<1x128xf32, #tpu.memory_space<any>>
        %c4_i32_47 = arith.constant 4 : i32
        %c0_i32_48 = arith.constant 0 : i32
        %85 = tpu.memref_slice %arg6[%43, %c4_i32_47, %c0_i32_48] : memref<2x8x128xf32, #tpu.memory_space<vmem>> -> memref<1x1x128xf32, #tpu.memory_space<vmem>>
        %86 = tpu.memref_squeeze %85 : memref<1x1x128xf32, #tpu.memory_space<vmem>> -> memref<1x128xf32, #tpu.memory_space<vmem>>
        %87 = tpu.memref_slice %arg7[%43] : memref<2x!tpu.dma_semaphore, #tpu.memory_space<semaphore_mem>> -> memref<1x!tpu.dma_semaphore, #tpu.memory_space<semaphore_mem>>
        %88 = tpu.memref_squeeze %87 : memref<1x!tpu.dma_semaphore, #tpu.memory_space<semaphore_mem>> -> memref<!tpu.dma_semaphore, #tpu.memory_space<semaphore_mem>>
        tpu.enqueue_dma source(%84 : memref<1x128xf32, #tpu.memory_space<any>>) target(%86 : memref<1x128xf32, #tpu.memory_space<vmem>>) target_semaphore(%88 : memref<!tpu.dma_semaphore, #tpu.memory_space<semaphore_mem>>)
        %c8_i32_49 = arith.constant 8 : i32
        %89 = arith.muli %32, %c8_i32_49 : i32
        %c5_i32 = arith.constant 5 : i32
        %90 = arith.addi %89, %c5_i32 : i32
        %91 = arith.index_cast %90 : i32 to index
        %92 = memref.load %arg2[%91] : memref<8xi32, #tpu.memory_space<smem>>
        %c0_i32_50 = arith.constant 0 : i32
        %93 = tpu.memref_slice %arg3[%92, %c0_i32_50] : memref<32x128xf32, #tpu.memory_space<any>> -> memref<1x128xf32, #tpu.memory_space<any>>
        %c5_i32_51 = arith.constant 5 : i32
        %c0_i32_52 = arith.constant 0 : i32
        %94 = tpu.memref_slice %arg6[%43, %c5_i32_51, %c0_i32_52] : memref<2x8x128xf32, #tpu.memory_space<vmem>> -> memref<1x1x128xf32, #tpu.memory_space<vmem>>
        %95 = tpu.memref_squeeze %94 : memref<1x1x128xf32, #tpu.memory_space<vmem>> -> memref<1x128xf32, #tpu.memory_space<vmem>>
        %96 = tpu.memref_slice %arg7[%43] : memref<2x!tpu.dma_semaphore, #tpu.memory_space<semaphore_mem>> -> memref<1x!tpu.dma_semaphore, #tpu.memory_space<semaphore_mem>>
        %97 = tpu.memref_squeeze %96 : memref<1x!tpu.dma_semaphore, #tpu.memory_space<semaphore_mem>> -> memref<!tpu.dma_semaphore, #tpu.memory_space<semaphore_mem>>
        tpu.enqueue_dma source(%93 : memref<1x128xf32, #tpu.memory_space<any>>) target(%95 : memref<1x128xf32, #tpu.memory_space<vmem>>) target_semaphore(%97 : memref<!tpu.dma_semaphore, #tpu.memory_space<semaphore_mem>>)
        %c8_i32_53 = arith.constant 8 : i32
        %98 = arith.muli %32, %c8_i32_53 : i32
        %c6_i32 = arith.constant 6 : i32
        %99 = arith.addi %98, %c6_i32 : i32
        %100 = arith.index_cast %99 : i32 to index
        %101 = memref.load %arg2[%100] : memref<8xi32, #tpu.memory_space<smem>>
        %c0_i32_54 = arith.constant 0 : i32
        %102 = tpu.memref_slice %arg3[%101, %c0_i32_54] : memref<32x128xf32, #tpu.memory_space<any>> -> memref<1x128xf32, #tpu.memory_space<any>>
        %c6_i32_55 = arith.constant 6 : i32
        %c0_i32_56 = arith.constant 0 : i32
        %103 = tpu.memref_slice %arg6[%43, %c6_i32_55, %c0_i32_56] : memref<2x8x128xf32, #tpu.memory_space<vmem>> -> memref<1x1x128xf32, #tpu.memory_space<vmem>>
        %104 = tpu.memref_squeeze %103 : memref<1x1x128xf32, #tpu.memory_space<vmem>> -> memref<1x128xf32, #tpu.memory_space<vmem>>
        %105 = tpu.memref_slice %arg7[%43] : memref<2x!tpu.dma_semaphore, #tpu.memory_space<semaphore_mem>> -> memref<1x!tpu.dma_semaphore, #tpu.memory_space<semaphore_mem>>
        %106 = tpu.memref_squeeze %105 : memref<1x!tpu.dma_semaphore, #tpu.memory_space<semaphore_mem>> -> memref<!tpu.dma_semaphore, #tpu.memory_space<semaphore_mem>>
        tpu.enqueue_dma source(%102 : memref<1x128xf32, #tpu.memory_space<any>>) target(%104 : memref<1x128xf32, #tpu.memory_space<vmem>>) target_semaphore(%106 : memref<!tpu.dma_semaphore, #tpu.memory_space<semaphore_mem>>)
        %c8_i32_57 = arith.constant 8 : i32
        %107 = arith.muli %32, %c8_i32_57 : i32
        %c7_i32 = arith.constant 7 : i32
        %108 = arith.addi %107, %c7_i32 : i32
        %109 = arith.index_cast %108 : i32 to index
        %110 = memref.load %arg2[%109] : memref<8xi32, #tpu.memory_space<smem>>
        %c0_i32_58 = arith.constant 0 : i32
        %111 = tpu.memref_slice %arg3[%110, %c0_i32_58] : memref<32x128xf32, #tpu.memory_space<any>> -> memref<1x128xf32, #tpu.memory_space<any>>
        %c7_i32_59 = arith.constant 7 : i32
        %c0_i32_60 = arith.constant 0 : i32
        %112 = tpu.memref_slice %arg6[%43, %c7_i32_59, %c0_i32_60] : memref<2x8x128xf32, #tpu.memory_space<vmem>> -> memref<1x1x128xf32, #tpu.memory_space<vmem>>
        %113 = tpu.memref_squeeze %112 : memref<1x1x128xf32, #tpu.memory_space<vmem>> -> memref<1x128xf32, #tpu.memory_space<vmem>>
        %114 = tpu.memref_slice %arg7[%43] : memref<2x!tpu.dma_semaphore, #tpu.memory_space<semaphore_mem>> -> memref<1x!tpu.dma_semaphore, #tpu.memory_space<semaphore_mem>>
        %115 = tpu.memref_squeeze %114 : memref<1x!tpu.dma_semaphore, #tpu.memory_space<semaphore_mem>> -> memref<!tpu.dma_semaphore, #tpu.memory_space<semaphore_mem>>
        tpu.enqueue_dma source(%111 : memref<1x128xf32, #tpu.memory_space<any>>) target(%113 : memref<1x128xf32, #tpu.memory_space<vmem>>) target_semaphore(%115 : memref<!tpu.dma_semaphore, #tpu.memory_space<semaphore_mem>>)
      } else {
      }
      %c0_i32_15 = arith.constant 0 : i32
      %c0_i32_16 = arith.constant 0 : i32
      %26 = tpu.memref_slice %arg6[%9, %c0_i32_15, %c0_i32_16] : memref<2x8x128xf32, #tpu.memory_space<vmem>> -> memref<1x8x128xf32, #tpu.memory_space<vmem>>
      %27 = tpu.memref_squeeze %26 : memref<1x8x128xf32, #tpu.memory_space<vmem>> -> memref<8x128xf32, #tpu.memory_space<vmem>>
      %c0_i32_17 = arith.constant 0 : i32
      %c0_i32_18 = arith.constant 0 : i32
      %28 = tpu.memref_slice %arg6[%9, %c0_i32_17, %c0_i32_18] : memref<2x8x128xf32, #tpu.memory_space<vmem>> -> memref<1x8x128xf32, #tpu.memory_space<vmem>>
      %29 = tpu.memref_squeeze %28 : memref<1x8x128xf32, #tpu.memory_space<vmem>> -> memref<8x128xf32, #tpu.memory_space<vmem>>
      %30 = tpu.memref_slice %arg7[%9] : memref<2x!tpu.dma_semaphore, #tpu.memory_space<semaphore_mem>> -> memref<1x!tpu.dma_semaphore, #tpu.memory_space<semaphore_mem>>
      %31 = tpu.memref_squeeze %30 : memref<1x!tpu.dma_semaphore, #tpu.memory_space<semaphore_mem>> -> memref<!tpu.dma_semaphore, #tpu.memory_space<semaphore_mem>>
      tpu.wait_dma2 semaphore(%31 : memref<!tpu.dma_semaphore, #tpu.memory_space<semaphore_mem>>) src(%27 : memref<8x128xf32, #tpu.memory_space<vmem>>) dst(%29 : memref<8x128xf32, #tpu.memory_space<vmem>>)
    } else {
    }
    %13 = arith.index_cast %9 : i32 to index
    %c0 = arith.constant 0 : index
    %c0_5 = arith.constant 0 : index
    %14 = vector.load %arg6[%13, %c0, %c0_5] : memref<2x8x128xf32, #tpu.memory_space<vmem>>, vector<1x8x128xf32>
    %15 = vector.shape_cast %14 : vector<1x8x128xf32> to vector<8x128xf32>
    %c0_6 = arith.constant 0 : index
    %c0_7 = arith.constant 0 : index
    %16 = vector.load %arg4[%c0_6, %c0_7] : memref<128x128xf32, #tpu.memory_space<vmem>>, vector<128x128xf32>
    %cst = arith.constant dense<0.000000e+00> : vector<8x128xf32>
    %17 = tpu.matmul %15, %16, %cst {dimension_numbers = #tpu.dot_dimension_numbers<[1], [0], [0], [1], [0, 0, 1, 1], [], []>} : vector<8x128xf32>, vector<128x128xf32>, vector<8x128xf32> -> vector<8x128xf32>
    %c0_8 = arith.constant 0 : index
    %c0_9 = arith.constant 0 : index
    %18 = vector.load %arg5[%c0_8, %c0_9] : memref<8x128xf32, #tpu.memory_space<vmem>>, vector<8x128xf32>
    tpu.vector_store %arg5[%c0_8, %c0_9], %17 {strides = array<i32>} : memref<8x128xf32, #tpu.memory_space<vmem>>, vector<8x128xf32>,
    return
  }
  func.func @transform_1(%arg0: i32, %arg1: i32, %arg2: memref<8xi32, #tpu.memory_space<smem>>) -> (i32, i32) {
    %c0_i32 = arith.constant 0 : i32
    %c0_i32_0 = arith.constant 0 : i32
    return %arg1, %c0_i32 : i32, i32
  }
  func.func @transform_2(%arg0: i32, %arg1: i32, %arg2: memref<8xi32, #tpu.memory_space<smem>>) -> (i32, i32) {
    %c0_i32 = arith.constant 0 : i32
    %c0_i32_0 = arith.constant 0 : i32
    return %arg0, %c0_i32 : i32, i32
  }
}

</mosaic_0001>

<bundles_post_ra>
// kernel: tpu_custom_call.1
= control target key start
LH: loop header
LB: loop body
LE: loop exit
PB: predicated region body
PF: predicated region fallthrough
CT: control target
= control target key end

     0   :  { %s1081_s0 = inlined_call_operand.hbm [shape: s32[8], index: 0, kind: input, shape index: {}]   ;;  %s1082_s1 = inlined_call_operand.hbm [shape: f32[32,128], index: 1, kind: input, shape index: {}]   ;;  %s1083_s2 = inlined_call_operand.hbm [shape: f32[128,128], index: 2, kind: input, shape index: {}]   ;;  %s1084_s3 = inlined_call_operand.hbm [shape: f32[8,128], index: 3, kind: output, shape index: {}]  }
   0x1   :  { %s624_s14 = scalar_lea.hbm %s1081_s0, 16 }
   0x2   :  { %p625_p0 = scmp.ne.s32.totalorder %s1081_s0, %s624_s14  ;;  %p628_p1 = scmp.lt.u32.totalorder %s624_s14, %s1081_s0 }
   0x4   :  { %p630_p2 = pnand %p628_p1, %p625_p0 }
   0x6   :  { %633 = shalt.err (!%p630_p2)  }
   0x7   :  { %s878_s19 = smov [#allocation5]  }
   0x8   :  { %9 = dma.hbm_to_smem %s1081_s0, 16, %s878_s19, [#allocation4] }
   0x9   :  { %870 = dma.done.wait [#allocation4], 16 }
   0xa   :  { %871 = vsyncadd [#allocation4], 4294967280 }
   0xb   :  { %11 = sfence }
   0xc   :  { %12 = vsyncpa [#allocation7], 0 }
   0xd   :  { %13 = vsyncpa [#allocation8], 0  ;;  %s879_s22 = smov [#allocation6]   ;;  %s634_s26 = scalar_lea.hbm %s1083_s2, 2048 }
   0xe   :  { %s19_s23 = sshll.u32 %s879_s22, 4  ;;  %p635_p3 = scmp.ne.s32.totalorder %s1083_s2, %s634_s26  ;;  %s20_s23 = int_to_ptr.vmem [resolvable:$true] %s19_s23 }
   0xf   :  { %p638_p4 = scmp.lt.u32.totalorder %s634_s26, %s1083_s2 }
  0x11   :  { %p640_p5 = pnand %p638_p4, %p635_p3 }
  0x13   :  { %643 = shalt.err (!%p640_p5)
}
  0x14   :  { %s644_s0 = scalar_lea.vmem %s20_s23, 2048  ;;  %p649_p7 = scmp.lt.s32.totalorder %s20_s23, %s20_s23 }
  0x15   :  { %p645_p6 = scmp.ne.s32.totalorder %s20_s23, %s644_s0  ;;  %p650_p8 = scmp.lt.s32.totalorder %s644_s0, %s644_s0 }
  0x17   :  { %p651_p9 = por %p650_p8, %p649_p7 }
  0x19   :  { %p652_p10 = pnand %p651_p9, %p645_p6 }
  0x1b   :  { %655 = shalt.err (!%p652_p10)
}
  0x1c   :  { %s880_s4 = smov 128   ;;  %s881_s5 = smov 8  }
  0x1d   :  { %25 = dma.hbm_to_vmem [thread:$0]  %s1083_s2, 2048, %s20_s23, [#allocation7], %s880_s4, %s880_s4, %s881_s5  }
  0x1e   :  { %872 = dma.done.wait [#allocation7], 2048  }
  0x1f   :  { %873 = vsyncadd [#allocation7], 4294965248  ;;  %s45_s8 = sld [smem:[#allocation5]]  ;;  %s882_s9 = smov [#allocation2]  }
  0x20   :  { %s55_s10 = sshll.u32 %s882_s9, 4  ;;  %s940_s11 = sld [smem:[#allocation5 + $0x1]]  ;;  %s938_s10 = int_to_ptr.vmem [resolvable:$true] %s55_s10 }
  0x21   :  { %s883_s12 = smov [#allocation2 + $0x1]   ;;  %s942_s14 = sld [smem:[#allocation5 + $0x2]] }
  0x22   :  { %s70_s13 = sshll.u32 %s883_s12, 4  ;;  %s884_s15 = smov [#allocation2 + $0x2]   ;;  %s944_s13 = int_to_ptr.vmem [resolvable:$true] %s70_s13 }
  0x23   :  { %s85_s16 = sshll.u32 %s884_s15, 4  ;;  %s946_s17 = sld [smem:[#allocation5 + $0x3]]  ;;  %s948_s16 = int_to_ptr.vmem [resolvable:$true] %s85_s16 }
  0x24   :  { %s885_s18 = smov [#allocation2 + $0x3]   ;;  %s959_s27 = scalar_lea.hbm %s1082_s1, 512 }
  0x25   :  { %s499_s2 = sshll.u32 %s45_s8, 4  ;;  %s950_s19 = sshll.u32 %s885_s18, 4  ;;  %s101_s19 = int_to_ptr.vmem [resolvable:$true] %s950_s19 }
  0x26   :  { %s47_s22 = scalar_lea.hbm %s1082_s1, %s499_s2  ;;  %s501_s23 = sshll.u32 %s940_s11, 4 }
  0x27   :  { %s656_s24 = scalar_lea.hbm %s47_s22, 16  ;;  %p659_p12 = scmp.lt.u32.totalorder %s47_s22, %s1082_s1 }
  0x28   :  { %p657_p11 = scmp.ne.s32.totalorder %s47_s22, %s656_s24  ;;  %p660_p13 = scmp.lt.u32.totalorder %s959_s27, %s656_s24 }
  0x29   :  { %p662_p1 = scmp.lt.u32.totalorder %s656_s24, %s47_s22 }
  0x2a   :  { %p661_p0 = por %p660_p13, %p659_p12 }
  0x2c   :  { %p663_p2 = por %p662_p1, %p661_p0 }
  0x2e   :  { %p664_p3 = pnand %p663_p2, %p657_p11 }
  0x30   :  { %667 = shalt.err (!%p664_p3)  }
  0x31   :  { %s668_s30 = scalar_lea.vmem %s938_s10, 16  ;;  %s968_s0 = scalar_lea.vmem %s938_s10, 256 }
  0x32   :  { %p669_p4 = scmp.ne.s32.totalorder %s938_s10, %s668_s30  ;;  %p673_p5 = scmp.lt.s32.totalorder %s938_s10, %s938_s10 }
  0x33   :  { %p674_p6 = scmp.lt.s32.totalorder %s968_s0, %s668_s30 }
  0x35   :  { %p675_p7 = por %p674_p6, %p673_p5 }
  0x37   :  { %p676_p8 = pnand %p675_p7, %p669_p4 }
  0x39   :  { %679 = shalt.err (!%p676_p8)  }
  0x3a   :  { %58 = dma.hbm_to_vmem [thread:$0]  %s47_s22, 16, %s938_s10, [#allocation3] }
  0x3b   :  { %s61_s6 = scalar_lea.hbm %s1082_s1, %s501_s23  ;;  %s503_s7 = sshll.u32 %s942_s14, 4 }
  0x3c   :  { %s680_s8 = scalar_lea.hbm %s61_s6, 16  ;;  %p683_p10 = scmp.lt.u32.totalorder %s61_s6, %s1082_s1 }
  0x3d   :  { %p681_p9 = scmp.ne.s32.totalorder %s61_s6, %s680_s8  ;;  %p684_p11 = scmp.lt.u32.totalorder %s959_s27, %s680_s8 }
  0x3e   :  { %p686_p13 = scmp.lt.u32.totalorder %s680_s8, %s61_s6 }
  0x3f   :  { %p685_p12 = por %p684_p11, %p683_p10 }
  0x41   :  { %p687_p0 = por %p686_p13, %p685_p12 }
  0x43   :  { %p688_p1 = pnand %p687_p0, %p681_p9 }
  0x45   :  { %691 = shalt.err (!%p688_p1)  }
  0x46   :  { %s692_s12 = scalar_lea.vmem %s944_s13, 16  ;;  %p697_p3 = scmp.lt.s32.totalorder %s944_s13, %s938_s10 }
  0x47   :  { %p693_p2 = scmp.ne.s32.totalorder %s944_s13, %s692_s12  ;;  %p698_p4 = scmp.lt.s32.totalorder %s968_s0, %s692_s12 }
  0x49   :  { %p699_p5 = por %p698_p4, %p697_p3 }
  0x4b   :  { %p700_p6 = pnand %p699_p5, %p693_p2 }
  0x4d   :  { %703 = shalt.err (!%p700_p6)  }
  0x4e   :  { %73 = dma.hbm_to_vmem [thread:$0]  %s61_s6, 16, %s944_s13, [#allocation3] }
  0x4f   :  { %s76_s2 = scalar_lea.hbm %s1082_s1, %s503_s7  ;;  %s505_s18 = sshll.u32 %s946_s17, 4 }
  0x50   :  { %s704_s20 = scalar_lea.hbm %s76_s2, 16  ;;  %p707_p8 = scmp.lt.u32.totalorder %s76_s2, %s1082_s1 }
  0x51   :  { %p705_p7 = scmp.ne.s32.totalorder %s76_s2, %s704_s20  ;;  %p708_p9 = scmp.lt.u32.totalorder %s959_s27, %s704_s20 }
  0x52   :  { %p710_p11 = scmp.lt.u32.totalorder %s704_s20, %s76_s2 }
  0x53   :  { %p709_p10 = por %p708_p9, %p707_p8 }
  0x55   :  { %p711_p12 = por %p710_p11, %p709_p10 }
  0x57   :  { %p712_p13 = pnand %p711_p12, %p705_p7 }
  0x59   :  { %715 = shalt.err (!%p712_p13)  }
  0x5a   :  { %s716_s13 = scalar_lea.vmem %s948_s16, 16  ;;  %p721_p1 = scmp.lt.s32.totalorder %s948_s16, %s938_s10 }
  0x5b   :  { %p717_p0 = scmp.ne.s32.totalorder %s948_s16, %s716_s13  ;;  %p722_p2 = scmp.lt.s32.totalorder %s968_s0, %s716_s13 }
  0x5d   :  { %p723_p3 = por %p722_p2, %p721_p1 }
  0x5f   :  { %p724_p4 = pnand %p723_p3, %p717_p0 }
  0x61   :  { %727 = shalt.err (!%p724_p4)  }
  0x62   :  { %88 = dma.hbm_to_vmem [thread:$0]  %s76_s2, 16, %s948_s16, [#allocation3] }
  0x63   :  { %s91_s24 = scalar_lea.hbm %s1082_s1, %s505_s18 }
  0x64   :  { %s728_s25 = scalar_lea.hbm %s91_s24, 16  ;;  %p731_p6 = scmp.lt.u32.totalorder %s91_s24, %s1082_s1 }
  0x65   :  { %p729_p5 = scmp.ne.s32.totalorder %s91_s24, %s728_s25  ;;  %p732_p7 = scmp.lt.u32.totalorder %s959_s27, %s728_s25 }
  0x66   :  { %p734_p9 = scmp.lt.u32.totalorder %s728_s25, %s91_s24 }
  0x67   :  { %p733_p8 = por %p732_p7, %p731_p6 }
  0x69   :  { %p735_p10 = por %p734_p9, %p733_p8 }
  0x6b   :  { %p736_p11 = pnand %p735_p10, %p729_p5 }
  0x6d   :  { %739 = shalt.err (!%p736_p11)  }
  0x6e   :  { %s740_s29 = scalar_lea.vmem %s101_s19, 16  ;;  %p745_p13 = scmp.lt.s32.totalorder %s101_s19, %s938_s10 }
  0x6f   :  { %p741_p12 = scmp.ne.s32.totalorder %s101_s19, %s740_s29  ;;  %p746_p0 = scmp.lt.s32.totalorder %s968_s0, %s740_s29 }
  0x71   :  { %p747_p1 = por %p746_p0, %p745_p13 }
  0x73   :  { %p748_p2 = pnand %p747_p1, %p741_p12 }
  0x75   :  { %751 = shalt.err (!%p748_p2)  }
  0x76   :  { %103 = dma.hbm_to_vmem [thread:$0]  %s91_s24, 16, %s101_s19, [#allocation3] }
  0x77   :  { %s506_s16 = sld [smem:[#allocation5 + $0x4]]  ;;  %s886_s30 = smov [#allocation2 + $0x4]  }
  0x78   :  { %s115_s4 = sshll.u32 %s886_s30, 4  ;;  %s1012_s5 = sld [smem:[#allocation5 + $0x5]]  ;;  %s116_s4 = int_to_ptr.vmem [resolvable:$true] %s115_s4 }
  0x79   :  { %s887_s6 = smov [#allocation2 + $0x5]   ;;  %s1014_s8 = sld [smem:[#allocation5 + $0x6]] }
  0x7a   :  { %s130_s7 = sshll.u32 %s887_s6, 4  ;;  %s888_s9 = smov [#allocation2 + $0x6]   ;;  %s1016_s7 = int_to_ptr.vmem [resolvable:$true] %s130_s7 }
  0x7b   :  { %s145_s11 = sshll.u32 %s888_s9, 4  ;;  %s1018_s12 = sld [smem:[#allocation5 + $0x7]]  ;;  %s1020_s11 = int_to_ptr.vmem [resolvable:$true] %s145_s11 }
  0x7d   :  { %s507_s14 = sshll.u32 %s506_s16, 4 }
  0x7e   :  { %s106_s2 = scalar_lea.hbm %s1082_s1, %s507_s14  ;;  %s509_s18 = sshll.u32 %s1012_s5, 4 }
  0x7f   :  { %s752_s20 = scalar_lea.hbm %s106_s2, 16  ;;  %p755_p4 = scmp.lt.u32.totalorder %s106_s2, %s1082_s1 }
  0x80   :  { %p753_p3 = scmp.ne.s32.totalorder %s106_s2, %s752_s20  ;;  %p756_p5 = scmp.lt.u32.totalorder %s959_s27, %s752_s20 }
  0x81   :  { %p758_p7 = scmp.lt.u32.totalorder %s752_s20, %s106_s2 }
  0x82   :  { %p757_p6 = por %p756_p5, %p755_p4 }
  0x84   :  { %p759_p8 = por %p758_p7, %p757_p6 }
  0x86   :  { %p760_p9 = pnand %p759_p8, %p753_p3 }
  0x88   :  { %763 = shalt.err (!%p760_p9)  }
  0x89   :  { %s764_s13 = scalar_lea.vmem %s116_s4, 16  ;;  %p769_p11 = scmp.lt.s32.totalorder %s116_s4, %s938_s10 }
  0x8a   :  { %p765_p10 = scmp.ne.s32.totalorder %s116_s4, %s764_s13  ;;  %p770_p12 = scmp.lt.s32.totalorder %s968_s0, %s764_s13 }
  0x8c   :  { %p771_p13 = por %p770_p12, %p769_p11 }
  0x8e   :  { %p772_p0 = pnand %p771_p13, %p765_p10 }
  0x90   :  { %775 = shalt.err (!%p772_p0)  }
  0x91   :  { %118 = dma.hbm_to_vmem [thread:$0]  %s106_s2, 16, %s116_s4, [#allocation3] }
  0x92   :  { %s121_s24 = scalar_lea.hbm %s1082_s1, %s509_s18  ;;  %s511_s25 = sshll.u32 %s1014_s8, 4 }
  0x93   :  { %s776_s26 = scalar_lea.hbm %s121_s24, 16  ;;  %p779_p2 = scmp.lt.u32.totalorder %s121_s24, %s1082_s1 }
  0x94   :  { %p777_p1 = scmp.ne.s32.totalorder %s121_s24, %s776_s26  ;;  %p780_p3 = scmp.lt.u32.totalorder %s959_s27, %s776_s26 }
  0x95   :  { %p782_p5 = scmp.lt.u32.totalorder %s776_s26, %s121_s24 }
  0x96   :  { %p781_p4 = por %p780_p3, %p779_p2 }
  0x98   :  { %p783_p6 = por %p782_p5, %p781_p4 }
  0x9a   :  { %p784_p7 = pnand %p783_p6, %p777_p1 }
  0x9c   :  { %787 = shalt.err (!%p784_p7)  }
  0x9d   :  { %s788_s16 = scalar_lea.vmem %s1016_s7, 16  ;;  %p793_p9 = scmp.lt.s32.totalorder %s1016_s7, %s938_s10 }
  0x9e   :  { %p789_p8 = scmp.ne.s32.totalorder %s1016_s7, %s788_s16  ;;  %p794_p10 = scmp.lt.s32.totalorder %s968_s0, %s788_s16 }
  0xa0   :  { %p795_p11 = por %p794_p10, %p793_p9 }
  0xa2   :  { %p796_p12 = pnand %p795_p11, %p789_p8 }
  0xa4   :  { %799 = shalt.err (!%p796_p12)  }
  0xa5   :  { %133 = dma.hbm_to_vmem [thread:$0]  %s121_s24, 16, %s1016_s7, [#allocation3] }
  0xa6   :  { %s136_s5 = scalar_lea.hbm %s1082_s1, %s511_s25  ;;  %s513_s6 = sshll.u32 %s1018_s12, 4 }
  0xa7   :  { %s800_s8 = scalar_lea.hbm %s136_s5, 16  ;;  %p803_p0 = scmp.lt.u32.totalorder %s136_s5, %s1082_s1 }
  0xa8   :  { %p801_p13 = scmp.ne.s32.totalorder %s136_s5, %s800_s8  ;;  %p804_p1 = scmp.lt.u32.totalorder %s959_s27, %s800_s8 }
  0xa9   :  { %p806_p3 = scmp.lt.u32.totalorder %s800_s8, %s136_s5 }
  0xaa   :  { %p805_p2 = por %p804_p1, %p803_p0 }
  0xac   :  { %p807_p4 = por %p806_p3, %p805_p2 }
  0xae   :  { %p808_p5 = pnand %p807_p4, %p801_p13 }
  0xb0   :  { %811 = shalt.err (!%p808_p5)  }
  0xb1   :  { %s812_s7 = scalar_lea.vmem %s1020_s11, 16  ;;  %p817_p7 = scmp.lt.s32.totalorder %s1020_s11, %s938_s10 }
  0xb2   :  { %p813_p6 = scmp.ne.s32.totalorder %s1020_s11, %s812_s7  ;;  %p818_p8 = scmp.lt.s32.totalorder %s968_s0, %s812_s7 }
  0xb4   :  { %p819_p9 = por %p818_p8, %p817_p7 }
  0xb6   :  { %p820_p10 = pnand %p819_p9, %p813_p6 }
  0xb8   :  { %823 = shalt.err (!%p820_p10)  }
  0xb9   :  { %148 = dma.hbm_to_vmem [thread:$0]  %s136_s5, 16, %s1020_s11, [#allocation3] }
  0xba   :  { %s151_s15 = scalar_lea.hbm %s1082_s1, %s513_s6  ;;  %s889_s2 = smov [#allocation2 + $0x7]  }
  0xbb   :  { %s160_s18 = sshll.u32 %s889_s2, 4  ;;  %s824_s20 = scalar_lea.hbm %s151_s15, 16  ;;  %s161_s18 = int_to_ptr.vmem [resolvable:$true] %s160_s18 }
  0xbc   :  { %p825_p11 = scmp.ne.s32.totalorder %s151_s15, %s824_s20  ;;  %p827_p12 = scmp.lt.u32.totalorder %s151_s15, %s1082_s1 }
  0xbd   :  { %p828_p13 = scmp.lt.u32.totalorder %s959_s27, %s824_s20  ;;  %p830_p1 = scmp.lt.u32.totalorder %s824_s20, %s151_s15 }
  0xbf   :  { %p829_p0 = por %p828_p13, %p827_p12 }
  0xc1   :  { %p831_p2 = por %p830_p1, %p829_p0 }
  0xc3   :  { %p832_p3 = pnand %p831_p2, %p825_p11 }
  0xc5   :  { %835 = shalt.err (!%p832_p3)  }
  0xc6   :  { %s836_s11 = scalar_lea.vmem %s161_s18, 16  ;;  %p841_p5 = scmp.lt.s32.totalorder %s161_s18, %s938_s10 }
  0xc7   :  { %p837_p4 = scmp.ne.s32.totalorder %s161_s18, %s836_s11  ;;  %p842_p6 = scmp.lt.s32.totalorder %s968_s0, %s836_s11 }
  0xc9   :  { %p843_p7 = por %p842_p6, %p841_p5 }
  0xcb   :  { %p844_p8 = pnand %p843_p7, %p837_p4 }
  0xcd   :  { %847 = shalt.err (!%p844_p8)  }
  0xce   :  { %163 = dma.hbm_to_vmem [thread:$0]  %s151_s15, 16, %s161_s18, [#allocation3] }
  0xcf   :  { %874 = dma.done.wait [#allocation3], 128 }
  0xd0   :  { %875 = vsyncadd [#allocation3], 4294967168  ;;  %v890_v0 = vmov 0.0|0.0   ;;  %vm891_vm0 = vmmov 0   ;;  %v892_v1 = vmov 0.0   ;;  %v325_v2 = vld [vmem:[#allocation6] sm:$0xff] }
  0xd1   :  { %584 = vmatprep.subr.bf16.mxu0 %v890_v0  ;;  %581 = vmatprep.mubr.msk.f32.mxu0 %vm891_vm0, %v892_v1  ;;  %v326_v3 = vld [vmem:[#allocation6 + $0x8] sm:$0xff]  ;;  %v327_v4 = vld [vmem:[#allocation6 + $0x10] sm:$0xff]  ;;  %v328_v6 = vld [vmem:[#allocation6 + $0x18] sm:$0xff]  ;;  %s893_s1 = smov [#allocation9]  }
  0xd2   :  { %v585_v5 = vpack.c.bf16 %v326_v3, %v325_v2  ;;  %v588_v7 = vpack.c.bf16 %v328_v6, %v327_v4  ;;  %v329_v8 = vld [vmem:[#allocation6 + $0x20] sm:$0xff]  ;;  %v330_v9 = vld [vmem:[#allocation6 + $0x28] sm:$0xff]  ;;  %v331_v11 = vld [vmem:[#allocation6 + $0x30] sm:$0xff]  ;;  %s418_s10 = sshll.u32 %s893_s1, 4  ;;  %s419_s10 = int_to_ptr.vmem [resolvable:$true] %s418_s10 }
  0xd3   :  { %v591_v10 = vpack.c.bf16 %v330_v9, %v329_v8  ;;  %v332_v12 = vld [vmem:[#allocation6 + $0x38] sm:$0xff]  ;;  %v333_v14 = vld [vmem:[#allocation6 + $0x40] sm:$0xff]  ;;  %v334_v15 = vld [vmem:[#allocation6 + $0x48] sm:$0xff]  ;;  %s848_s27 = scalar_lea.vmem %s419_s10, 128  ;;  %p853_p10 = scmp.lt.s32.totalorder %s419_s10, %s419_s10 }
  0xd4   :  { %586 = vmatpush3.bf16.msra.mxu0 %v585_v5  ;;  %v594_v13 = vpack.c.bf16 %v332_v12, %v331_v11  ;;  %v597_v16 = vpack.c.bf16 %v334_v15, %v333_v14  ;;  %v335_v17 = vld [vmem:[#allocation6 + $0x50] sm:$0xff]  ;;  %v336_v18 = vld [vmem:[#allocation6 + $0x58] sm:$0xff]  ;;  %v337_v20 = vld [vmem:[#allocation6 + $0x60] sm:$0xff]  ;;  %p849_p9 = scmp.ne.s32.totalorder %s419_s10, %s848_s27  ;;  %p854_p11 = scmp.lt.s32.totalorder %s848_s27, %s848_s27 }
  0xd5   :  { %587 = vmatprep.subr.bf16.mxu0 %v890_v0  ;;  %v600_v19 = vpack.c.bf16 %v336_v18, %v335_v17  ;;  %v338_v21 = vld [vmem:[#allocation6 + $0x68] sm:$0xff]  ;;  %v339_v23 = vld [vmem:[#allocation6 + $0x70] sm:$0xff]  ;;  %v340_v24 = vld [vmem:[#allocation6 + $0x78] sm:$0xff] }
  0xd6   :  { %v603_v22 = vpack.c.bf16 %v338_v21, %v337_v20  ;;  %v606_v25 = vpack.c.bf16 %v340_v24, %v339_v23  ;;  %v324_v26 = vld [vmem:[#allocation2] sm:$0xff]  ;;  %p855_p12 = por %p854_p11, %p853_p10 }
  0xd8   :  { %589 = vmatpush3.bf16.msra.mxu0 %v588_v7  ;;  %p856_p13 = pnand %p855_p12, %p849_p9 }
  0xd9   :  { %590 = vmatprep.subr.bf16.mxu0 %v890_v0 }
  0xdc   :  { %592 = vmatpush3.bf16.msra.mxu0 %v591_v10 }
  0xdd   :  { %593 = vmatprep.subr.bf16.mxu0 %v890_v0 }
  0xe0   :  { %595 = vmatpush3.bf16.msra.mxu0 %v594_v13 }
  0xe1   :  { %596 = vmatprep.subr.bf16.mxu0 %v890_v0 }
  0xe4   :  { %598 = vmatpush3.bf16.msra.mxu0 %v597_v16 }
  0xe5   :  { %599 = vmatprep.subr.bf16.mxu0 %v890_v0 }
  0xe8   :  { %601 = vmatpush3.bf16.msra.mxu0 %v600_v19 }
  0xe9   :  { %602 = vmatprep.subr.bf16.mxu0 %v890_v0 }
  0xec   :  { %604 = vmatpush3.bf16.msra.mxu0 %v603_v22 }
  0xed   :  { %605 = vmatprep.subr.bf16.mxu0 %v890_v0 }
  0xf0   :  { %607 = vmatpush3.bf16.msra.mxu0 %v606_v25 }
  0xf3   :  { %582 = vmatmul.mubr.f32.vlgmr.msra.gmra.mrb[0].mxu0 %v324_v26 }
 0x1c6   :  { %v407_v27 = vpop.f32.mrb[0].mxu0 }
 0x1c7   :  { %411 = vst [vmem:[#allocation9] sm:$0xff] %v407_v27  ;;  %v583_v28 = vpop.f32.mrb[1].mxu0 }
 0x1c8   :  { %859 = shalt.err (!%p856_p13)
}
 0x1c9   :  { %s860_s17 = scalar_lea.hbm %s1084_s3, 128 }
 0x1ca   :  { %p861_p0 = scmp.ne.s32.totalorder %s1084_s3, %s860_s17  ;;  %p864_p1 = scmp.lt.u32.totalorder %s860_s17, %s1084_s3 }
 0x1cc   :  { %p866_p2 = pnand %p864_p1, %p861_p0 }
 0x1ce   :  { %869 = shalt.err (!%p866_p2)
}
 0x1cf   :  { %421 = dma.vmem_to_hbm [thread:$0]  %s419_s10, 128, %s1084_s3, [#allocation8]  }
 0x1d0   :  { %876 = dma.done.wait [#allocation8], 128  }
 0x1d1   :  { %877 = vsyncadd [#allocation8], 4294967168 }
 0x1d2   :  { %425 = vsyncpa [#allocation7], 1 }
 0x1d3   :  { %426 = vsyncpa [#allocation8], 1 }
 0x1d4   :  { %427 = vsyncmov [#allocation3] }
 0x1d7   :  { %s428_s16 = vpop.sfrf %427 }
 0x1d8   :  { %p530_p3 = scmp.ne.s32.totalorder %s428_s16, 0 }
 0x1da   :  { %432 = shalt.err (%p530_p3)  }
 0x1db   :  { %434 = vsyncmov [#allocation3 + $0x1] }
 0x1de   :  { %s435_s30 = vpop.sfrf %434 }
 0x1df   :  { %p531_p4 = scmp.ne.s32.totalorder %s435_s30, 0 }
 0x1e1   :  { %439 = shalt.err (%p531_p4)  }

</bundles_post_ra>
